<compile_context>
chip_gen: v6e
topology: v6e:2x2x1
jax: 0.10.0
libtpu: 0.0.40
codegen_flags: <defaults>
</compile_context>

<pallas_src>
import functools

import jax
import jax.numpy as jnp
from jax import lax
from jax.experimental import pallas as pl
from jax.experimental.pallas import tpu as pltpu


def _tv_kernel(x_ref, out_ref, acc_ref, sh_ref, sw_ref, *,
               H, W, n_planes, tn, steps_per_split,
               inv_nh, inv_nw, need_plane_mask):
    c = pl.program_id(0)          # core-split index ("parallel")
    j = pl.program_id(1)          # plane-tile index ("arbitrary" reduction)
    HW = H * W

    @pl.when(j == 0)
    def _():
        # Seam masks folded together with the 1/count scales, computed once per
        # core-split and kept in VMEM (no per-step iota/broadcast rebuild).
        col = lax.broadcasted_iota(jnp.int32, (1, HW), 1)
        sh_ref[...] = jnp.where(col < (H - 1) * W,
                                jnp.float32(inv_nh), jnp.float32(0.0))
        sw_ref[...] = jnp.where(col % W != W - 1,
                                jnp.float32(inv_nw), jnp.float32(0.0))
        acc_ref[...] = jnp.zeros_like(acc_ref)

    x = x_ref[...]                                          # (tn, HW), in dtype
    # Down-neighbor (same column, next row)  -> x[p + W]
    dh = jnp.abs(pltpu.roll(x, shift=HW - W, axis=1) - x).astype(jnp.float32)
    # Right-neighbor                         -> x[p + 1]
    dw = jnp.abs(pltpu.roll(x, shift=HW - 1, axis=1) - x).astype(jnp.float32)

    contrib = dh * sh_ref[...] + dw * sw_ref[...]

    if need_plane_mask:
        # Last tile may run past N planes; padded rows hold garbage -> select 0.
        row = lax.broadcasted_iota(jnp.int32, (tn, 1), 0)
        plane = (c * steps_per_split + j) * tn + row
        contrib = jnp.where(plane < n_planes, contrib, 0.0)

    acc_ref[...] += contrib                                 # full-width VPU add

    @pl.when(j == pl.num_programs(1) - 1)
    def _():
        out_ref[...] = jnp.sum(acc_ref[...]).reshape(1, 1)


def total_variation_loss(x, *, max_accounted_bytes=24 * 1024 * 1024):
    """TV loss of a (B, C, H, W) tensor: mean(|diff_h|) + mean(|diff_w|)."""
    B, C, H, W = x.shape
    if H < 2 or W < 2:
        raise ValueError("Height and width must be greater than 1 for TV loss.")
    N = B * C
    HW = H * W
    x2 = x.reshape(N, HW)                 # free (row-major) lane-packing view

    # Per-plane VMEM footprint of one grid step (conservative):
    #   2x double-buffered input tile + f32 diff temporaries + f32 accumulator.
    it = x.dtype.itemsize
    per_plane = HW * (4 * it + 16)
    tn = max(1, min(N, max_accounted_bytes // max(per_plane, 1)))
    if tn >= 8:
        tn = (tn // 8) * 8                # sublane-aligned tiles when possible

    total_blocks = pl.cdiv(N, tn)
    # Split plane tiles across TensorCores when it divides evenly (v7x /
    # megacore); on 1-TC chips this is just one extra cheap outer iteration.
    splits = 2 if (total_blocks >= 2 and total_blocks % 2 == 0) else 1
    steps = total_blocks // splits
    need_plane_mask = (N % tn) != 0

    inv_nh = 1.0 / float(N * (H - 1) * W)
    inv_nw = 1.0 / float(N * H * (W - 1))

    kernel = functools.partial(
        _tv_kernel,
        H=H, W=W, n_planes=N, tn=tn, steps_per_split=steps,
        inv_nh=inv_nh, inv_nw=inv_nw, need_plane_mask=need_plane_mask)

    out = pl.pallas_call(
        kernel,
        out_shape=jax.ShapeDtypeStruct((splits, 1), jnp.float32),
        grid=(splits, steps),
        in_specs=[pl.BlockSpec((tn, HW), lambda c, j: (c * steps + j, 0))],
        out_specs=pl.BlockSpec((1, 1), lambda c, j: (c, 0)),
        scratch_shapes=[
            pltpu.VMEM((tn, HW), jnp.float32),   # running (pre-scaled) sum
            pltpu.VMEM((1, HW), jnp.float32),    # dh seam-mask * 1/n_h
            pltpu.VMEM((1, HW), jnp.float32),    # dw seam-mask * 1/n_w
        ],
        compiler_params=pltpu.CompilerParams(
            dimension_semantics=("parallel", "arbitrary"),
            vmem_limit_bytes=48 * 1024 * 1024,
        ),
    )(x2)
    return jnp.sum(out)


def total_variation_loss_ref(x):
    xf = x.astype(jnp.float32)
    dh = xf[:, :, 1:, :] - xf[:, :, :-1, :]
    dw = xf[:, :, :, 1:] - xf[:, :, :, :-1]
    return jnp.mean(jnp.abs(dh)) + jnp.mean(jnp.abs(dw))


if __name__ == "__main__":
    key = jax.random.PRNGKey(0)
    B, C, H, W = 2, 4, 16, 16
    x = jax.random.normal(key, (B, C, H, W), dtype=jnp.float32)

    loss = total_variation_loss(x)
    loss = jax.block_until_ready(loss)

    ref = total_variation_loss_ref(x)
    assert jnp.allclose(loss, ref, rtol=1e-5, atol=1e-6), (loss, ref)
    print("KERNEL_OK")
</pallas_src>

<mosaic_0001>
module attributes {stable_mosaic.version = 11 : i64} {
  func.func @_tv_kernel(%arg0: i32, %arg1: i32, %arg2: memref<8x256xf32, #tpu.memory_space<vmem>>, %arg3: memref<1x1xf32, #tpu.memory_space<vmem>>, %arg4: memref<8x256xf32, #tpu.memory_space<vmem>>, %arg5: memref<1x256xf32, #tpu.memory_space<vmem>>, %arg6: memref<1x256xf32, #tpu.memory_space<vmem>>) attributes {dimension_semantics = [#tpu.dimension_semantics<parallel>, #tpu.dimension_semantics<arbitrary>], iteration_bounds = array<i64: 1, 1>, scalar_prefetch = 0 : i64, scratch_operands = 3 : i64, tpu.core_type = #tpu.core_type<tc>, window_params = [{transform_indices = @transform_0, window_bounds = array<i64: 8, 256>}, {transform_indices = @transform_1, window_bounds = array<i64: 1, 1>}]} {
    %c0_i32 = arith.constant 0 : i32
    %0 = arith.cmpi eq, %arg1, %c0_i32 : i32
    %1 = arith.extui %0 : i1 to i32
    %c0_i32_0 = arith.constant 0 : i32
    %2 = arith.cmpi ne, %1, %c0_i32_0 : i32
    scf.if %2 {
      %23 = tpu.iota {dimensions = array<i32: 1>} : vector<1x256xi32>
      %c240_i32_12 = arith.constant 240 : i32
      %24 = vector.broadcast %c240_i32_12 : i32 to vector<1x256xi32>
      %25 = arith.cmpi slt, %23, %24 : vector<1x256xi32>
      %cst = arith.constant 5.2083336E-4 : f32
      %cst_13 = arith.constant 0.000000e+00 : f32
      %26 = vector.broadcast %cst : f32 to vector<1x256xf32>
      %27 = vector.broadcast %cst_13 : f32 to vector<1x256xf32>
      %28 = arith.select %25, %26, %27 : vector<1x256xi1>, vector<1x256xf32>
      %c0_14 = arith.constant 0 : index
      %c0_15 = arith.constant 0 : index
      %29 = vector.load %arg5[%c0_14, %c0_15] : memref<1x256xf32, #tpu.memory_space<vmem>>, vector<1x256xf32>
      tpu.vector_store %arg5[%c0_14, %c0_15], %28 {strides = array<i32>} : memref<1x256xf32, #tpu.memory_space<vmem>>, vector<1x256xf32>,
      %c16_i32 = arith.constant 16 : i32
      %c0_i32_16 = arith.constant 0 : i32
      %30 = arith.cmpi eq, %c16_i32, %c0_i32_16 : i32
      %c1_i32 = arith.constant 1 : i32
      %31 = arith.select %30, %c1_i32, %c16_i32 : i32
      %32 = vector.broadcast %31 : i32 to vector<1x256xi32>
      %33 = arith.remsi %23, %32 : vector<1x256xi32>
      %c0_i32_17 = arith.constant 0 : i32
      %34 = vector.broadcast %c0_i32_17 : i32 to vector<1x256xi32>
      %35 = arith.cmpi ne, %33, %34 : vector<1x256xi32>
      %c0_i32_18 = arith.constant 0 : i32
      %36 = vector.broadcast %c0_i32_18 : i32 to vector<1x256xi32>
      %37 = arith.cmpi slt, %33, %36 : vector<1x256xi32>
      %c0_i32_19 = arith.constant 0 : i32
      %38 = arith.cmpi slt, %31, %c0_i32_19 : i32
      %39 = vector.broadcast %38 : i1 to vector<1x256xi1>
      %40 = vector.broadcast %39 : vector<1x256xi1> to vector<1x256xi1>
      %41 = arith.xori %37, %40 : vector<1x256xi1>
      %42 = arith.andi %41, %35 : vector<1x256xi1>
      %43 = vector.broadcast %31 : i32 to vector<1x256xi32>
      %44 = arith.addi %33, %43 : vector<1x256xi32>
      %45 = arith.select %42, %44, %33 : vector<1x256xi1>, vector<1x256xi32>
      %c15_i32 = arith.constant 15 : i32
      %46 = vector.broadcast %c15_i32 : i32 to vector<1x256xi32>
      %47 = arith.cmpi ne, %45, %46 : vector<1x256xi32>
      %cst_20 = arith.constant 5.2083336E-4 : f32
      %cst_21 = arith.constant 0.000000e+00 : f32
      %48 = vector.broadcast %cst_20 : f32 to vector<1x256xf32>
      %49 = vector.broadcast %cst_21 : f32 to vector<1x256xf32>
      %50 = arith.select %47, %48, %49 : vector<1x256xi1>, vector<1x256xf32>
      %c0_22 = arith.constant 0 : index
      %c0_23 = arith.constant 0 : index
      %51 = vector.load %arg6[%c0_22, %c0_23] : memref<1x256xf32, #tpu.memory_space<vmem>>, vector<1x256xf32>
      tpu.vector_store %arg6[%c0_22, %c0_23], %50 {strides = array<i32>} : memref<1x256xf32, #tpu.memory_space<vmem>>, vector<1x256xf32>,
      %cst_24 = arith.constant 0.000000e+00 : f32
      %52 = vector.broadcast %cst_24 : f32 to vector<8x256xf32>
      %c0_25 = arith.constant 0 : index
      %c0_26 = arith.constant 0 : index
      %53 = vector.load %arg4[%c0_25, %c0_26] : memref<8x256xf32, #tpu.memory_space<vmem>>, vector<8x256xf32>
      tpu.vector_store %arg4[%c0_25, %c0_26], %52 {strides = array<i32>} : memref<8x256xf32, #tpu.memory_space<vmem>>, vector<8x256xf32>,
    } else {
    }
    %c0 = arith.constant 0 : index
    %c0_1 = arith.constant 0 : index
    %3 = vector.load %arg2[%c0, %c0_1] : memref<8x256xf32, #tpu.memory_space<vmem>>, vector<8x256xf32>
    %c240_i32 = arith.constant 240 : i32
    %4 = tpu.dynamic_rotate %3 by %c240_i32 dim 1 : vector<8x256xf32>, i32 -> vector<8x256xf32>
    %5 = arith.subf %4, %3 : vector<8x256xf32>
    %6 = math.absf %5 : vector<8x256xf32>
    %c255_i32 = arith.constant 255 : i32
    %7 = tpu.dynamic_rotate %3 by %c255_i32 dim 1 : vector<8x256xf32>, i32 -> vector<8x256xf32>
    %8 = arith.subf %7, %3 : vector<8x256xf32>
    %9 = math.absf %8 : vector<8x256xf32>
    %c0_2 = arith.constant 0 : index
    %c0_3 = arith.constant 0 : index
    %10 = vector.load %arg5[%c0_2, %c0_3] : memref<1x256xf32, #tpu.memory_space<vmem>>, vector<1x256xf32>
    %11 = vector.broadcast %10 : vector<1x256xf32> to vector<8x256xf32>
    %12 = arith.mulf %6, %11 : vector<8x256xf32>
    %c0_4 = arith.constant 0 : index
    %c0_5 = arith.constant 0 : index
    %13 = vector.load %arg6[%c0_4, %c0_5] : memref<1x256xf32, #tpu.memory_space<vmem>>, vector<1x256xf32>
    %14 = vector.broadcast %13 : vector<1x256xf32> to vector<8x256xf32>
    %15 = arith.mulf %9, %14 : vector<8x256xf32>
    %16 = arith.addf %12, %15 : vector<8x256xf32>
    %c0_6 = arith.constant 0 : index
    %c0_7 = arith.constant 0 : index
    %17 = vector.load %arg4[%c0_6, %c0_7] : memref<8x256xf32, #tpu.memory_space<vmem>>, vector<8x256xf32>
    %18 = arith.addf %17, %16 : vector<8x256xf32>
    %c0_8 = arith.constant 0 : index
    %c0_9 = arith.constant 0 : index
    %19 = vector.load %arg4[%c0_8, %c0_9] : memref<8x256xf32, #tpu.memory_space<vmem>>, vector<8x256xf32>
    tpu.vector_store %arg4[%c0_8, %c0_9], %18 {strides = array<i32>} : memref<8x256xf32, #tpu.memory_space<vmem>>, vector<8x256xf32>,
    %c0_i32_10 = arith.constant 0 : i32
    %20 = arith.cmpi eq, %arg1, %c0_i32_10 : i32
    %21 = arith.extui %20 : i1 to i32
    %c0_i32_11 = arith.constant 0 : i32
    %22 = arith.cmpi ne, %21, %c0_i32_11 : i32
    scf.if %22 {
      %c0_12 = arith.constant 0 : index
      %c0_13 = arith.constant 0 : index
      %23 = vector.load %arg4[%c0_12, %c0_13] : memref<8x256xf32, #tpu.memory_space<vmem>>, vector<8x256xf32>
      %24 = vector.shape_cast %23 : vector<8x256xf32> to vector<1x8x256xf32>
      %cst = arith.constant dense<0.000000e+00> : vector<1xf32>
      %25 = vector.multi_reduction <add>, %24, %cst [1, 2] : vector<1x8x256xf32> to vector<1xf32>
      %26 = vector.shape_cast %25 : vector<1xf32> to vector<1x1x1xf32>
      %27 = vector.extract %26[0, 0, 0] : f32 from vector<1x1x1xf32>
      %28 = vector.broadcast %27 : f32 to vector<1x1xf32>
      %c0_14 = arith.constant 0 : index
      %c0_15 = arith.constant 0 : index
      %29 = vector.load %arg3[%c0_14, %c0_15] : memref<1x1xf32, #tpu.memory_space<vmem>>, vector<1x1xf32>
      tpu.vector_store %arg3[%c0_14, %c0_15], %28 {strides = array<i32>} : memref<1x1xf32, #tpu.memory_space<vmem>>, vector<1x1xf32>,
    } else {
    }
    return
  }
  func.func @transform_0(%arg0: i32, %arg1: i32) -> (i32, i32) {
    %c1_i32 = arith.constant 1 : i32
    %0 = arith.muli %arg0, %c1_i32 : i32
    %1 = arith.addi %0, %arg1 : i32
    %c0_i32 = arith.constant 0 : i32
    %c0_i32_0 = arith.constant 0 : i32
    return %1, %c0_i32 : i32, i32
  }
  func.func @transform_1(%arg0: i32, %arg1: i32) -> (i32, i32) {
    %c0_i32 = arith.constant 0 : i32
    %c0_i32_0 = arith.constant 0 : i32
    return %arg0, %c0_i32 : i32, i32
  }
}

</mosaic_0001>

<bundles_post_ra>
// kernel: tpu_custom_call.1
= control target key start
LH: loop header
LB: loop body
LE: loop exit
PB: predicated region body
PF: predicated region fallthrough
CT: control target
= control target key end

     0   :  { %6 = vsyncpa [#allocation6], 0  ;;  %s280_s0 = inlined_call_operand.hbm [shape: f32[8,256], index: 0, kind: input, shape index: {}]   ;;  %s281_s1 = inlined_call_operand.hbm [shape: f32[1,1], index: 1, kind: output, shape index: {}]  }
   0x1   :  { %7 = vsyncpa [#allocation7], 0  ;;  %s257_s6 = smov [#allocation5]  }
   0x2   :  { %s18_s7 = sshll.u32 %s257_s6, 4  ;;  %s19_s7 = int_to_ptr.vmem [resolvable:$true] %s18_s7 }
   0x3   :  { %s221_s8 = scalar_lea.vmem %s19_s7, 256  ;;  %p226_p1 = scmp.lt.s32.totalorder %s19_s7, %s19_s7 }
   0x4   :  { %p222_p0 = scmp.ne.s32.totalorder %s19_s7, %s221_s8  ;;  %p227_p2 = scmp.lt.s32.totalorder %s221_s8, %s221_s8 }
   0x6   :  { %p228_p3 = por %p227_p2, %p226_p1 }
   0x8   :  { %p229_p4 = pnand %p228_p3, %p222_p0 }
   0xa   :  { %232 = shalt.err (!%p229_p4)
}
   0xb   :  { %21 = dma.hbm_to_vmem [thread:$0]  %s280_s0, 256, %s19_s7, [#allocation6]  }
   0xc   :  { %253 = dma.done.wait [#allocation6], 256  }
   0xd   :  { %254 = vsyncadd [#allocation6], 4294967040  ;;  %v30_v0 = vlaneseq  ;;  %v258_v2 = vmov 1966171168   ;;  %v109_v10 = vld [vmem:[#allocation5] sm:$0xff]  ;;  %v259_v11 = vmov 0.0  }
   0xe   :  { %v41_v3 = vunpack.c.l.s4 %v258_v2  ;;  %s260_s11 = smov 127   ;;  %s261_s0 = smov 112   ;;  %v262_v14 = vmov 0.00052083336   ;;  %v110_v16 = vld [vmem:[#allocation5 + $0x8] sm:$0xff]  ;;  %vm187_vm6 = vcmask 0  }
   0xf   :  { %v31_v1 = vand.u32 127, %v30_v0  ;;  %v44_v4 = vshrl.u32 %v30_v0, 7  ;;  %124 = vrot.lane.b32.xlu1 %v109_v10, %s260_s11  ;;  %111 = vrot.lane.b32.xlu0 %v109_v10, %s261_s0  ;;  %vm57_vm3 = vcmp.lt.s32.totalorder %v30_v0, 256  ;;  %s263_s12 = smov [#allocation8]  }
  0x10   :  { %v42_v6 = vunpack.c.0.s8 %v41_v3  ;;  %s195_s13 = sshll.u32 %s263_s12, 4  ;;  %s196_s13 = int_to_ptr.vmem [resolvable:$true] %s195_s13 }
  0x11   :  { %v32_v5 = vadd.s32 128, %v31_v1  ;;  %v64_v7 = vand.u32 15, %v31_v1  ;;  %v139_v25 = vsub.s32 0, %v44_v4  ;;  %v143_v26 = vsub.s32 1, %v44_v4  ;;  %s233_s15 = scalar_lea.vmem %s196_s13, 16  ;;  %s237_s16 = scalar_lea.vmem %s196_s13, 32 }
  0x12   :  { %v45_v8 = vsub.s32 %v42_v6, %v44_v4  ;;  %vm128_vm4 = vcmp.lt.s32.totalorder %v31_v1, 127  ;;  %vm117_vm5 = vcmp.lt.s32.totalorder %v31_v1, 112  ;;  %p234_p5 = scmp.ne.s32.totalorder %s196_s13, %s233_s15  ;;  %p238_p6 = scmp.lt.s32.totalorder %s196_s13, %s196_s13 }
  0x13   :  { %vm34_vm0 = vcmp.lt.s32.totalorder %v32_v5, 240  ;;  %v71_v9 = vand.u32 15, %v32_v5  ;;  %vm84_vm1 = vcmp.ne.s32.totalorder %v64_v7, 15  ;;  %126 = vrot.lane.b32.xlu1 %v110_v16, %s260_s11  ;;  %113 = vrot.lane.b32.xlu0 %v110_v16, %s261_s0  ;;  %p239_p7 = scmp.lt.s32.totalorder %s237_s16, %s233_s15 }
  0x14   :  { %v36_v12 = vsel %vm34_vm0, 0.00052083336, %v259_v11  ;;  %v86_v13 = vsel %vm84_vm1, 0.00052083336, %v259_v11 }
  0x15   :  { %v39_v15 = vcombine.low %v262_v14, %v36_v12  ;;  %vm85_vm2 = vcmp.ne.s32.totalorder %v71_v9, 15  ;;  %p240_p8 = por %p239_p7, %p238_p6 }
  0x16   :  { %v87_v17 = vsel %vm85_vm2, 0.00052083336, %v259_v11 }
  0x17   :  { %v46_v18 = vrot.slane %v39_v15, %v45_v8  ;;  %v90_v19 = vcombine.low %v86_v13, %v87_v17  ;;  %p241_p9 = pnand %p240_p8, %p234_p5 }
  0x19   :  { %v53_v20 = vrot.slane %v46_v18, %v45_v8  ;;  %v97_v21 = vrot.slane %v90_v19, %v45_v8 }
  0x1b   :  { %v104_v22 = vrot.slane %v97_v21, %v45_v8  ;;  %59 = vst.msk [vmem:[#allocation3] sm:$0x3] %vm57_vm3, %v53_v20 }
  0x1d   :  { %106 = vst.msk [vmem:[#allocation4] sm:$0x3] %vm57_vm3, %v104_v22 }
  0x22   :  { %v135_v28 = vld [vmem:[#allocation3] sm:$0x3] }
  0x23   :  { %v140_v33 = vrot.slane %v135_v28, %v139_v25  ;;  %v144_v42 = vrot.slane %v135_v28, %v143_v26 }
  0x24   :  { %v149_v27 = vld [vmem:[#allocation4] sm:$0x3] }
  0x25   :  { %v154_v30 = vrot.slane %v149_v27, %v139_v25  ;;  %v158_v31 = vrot.slane %v149_v27, %v143_v26 }
  0x81   :  { %v125_v23 = vpop.permute.xlu1 %124  ;;  %v112_v24 = vpop.permute.xlu0 %111 }
  0x85   :  { %v127_v29 = vpop.permute.xlu1 %126  ;;  %v114_v32 = vpop.permute.xlu0 %113 }
  0x86   :  { %v129_v34 = vsel %vm128_vm4, %v125_v23, %v127_v29  ;;  %v130_v35 = vsel %vm128_vm4, %v127_v29, %v125_v23  ;;  %v118_v36 = vsel %vm117_vm5, %v112_v24, %v114_v32  ;;  %v119_v37 = vsel %vm117_vm5, %v114_v32, %v112_v24 }
  0x87   :  { %v131_v38 = vsub.f32 %v129_v34, %v109_v10  ;;  %v132_v39 = vsub.f32 %v130_v35, %v110_v16  ;;  %v120_v40 = vsub.f32 %v118_v36, %v109_v10  ;;  %v121_v41 = vsub.f32 %v119_v37, %v110_v16 }
  0x89   :  { %v133_v43 = vand.u32 2147483647, %v131_v38  ;;  %v134_v44 = vand.u32 2147483647, %v132_v39  ;;  %v122_v45 = vand.u32 2147483647, %v120_v40 }
  0x8a   :  { %v123_v46 = vand.u32 2147483647, %v121_v41 }
  0x8b   :  { %v161_v47 = vmul.f32 %v154_v30, %v133_v43  ;;  %v162_v48 = vmul.f32 %v158_v31, %v134_v44  ;;  %v147_v49 = vmul.f32 %v140_v33, %v122_v45 }
  0x8c   :  { %v148_v50 = vmul.f32 %v144_v42, %v123_v46 }
  0x8d   :  { %v163_v51 = vadd.f32 %v161_v47, %v147_v49 }
  0x8e   :  { %v164_v52 = vadd.f32 %v162_v48, %v148_v50 }
  0x90   :  { %v176_v53 = vadd.f32 %v164_v52, %v163_v51 }
  0x92   :  { %177 = vadd.xlane.f32.xlu0 %v176_v53 }
 0x11b   :  { %v178_v54 = vpop.xlane.xlu0 %177 }
 0x11c   :  { %v179_v55 = vrot.slane %v178_v54, 4 }
 0x11e   :  { %v180_v56 = vadd.f32 %v179_v55, %v178_v54 }
 0x120   :  { %v181_v57 = vrot.slane %v180_v56, 2 }
 0x122   :  { %v182_v58 = vadd.f32 %v181_v57, %v180_v56 }
 0x124   :  { %v183_v59 = vrot.slane %v182_v58, 1 }
 0x126   :  { %v184_v60 = vadd.f32 %v183_v59, %v182_v58 }
 0x128   :  { %204 = vpush %v184_v60 }
 0x159   :  { %s205_s14 = spop %204 }
 0x15a   :  { %v186_v61 = vstv %s205_s14 }
 0x15b   :  { %188 = vst.msk [vmem:[#allocation8] sm:$0x1] %vm187_vm6, %v186_v61 }
 0x15c   :  { %244 = shalt.err (!%p241_p9)
}
 0x15d   :  { %198 = dma.vmem_to_hbm [thread:$0]  %s196_s13, 16, %s281_s1, [#allocation7]  }
 0x15e   :  { %255 = dma.done.wait [#allocation7], 16  }
 0x15f   :  { %256 = vsyncadd [#allocation7], 4294967280 }
 0x160   :  { %202 = vsyncpa [#allocation6], 1 }
 0x161   :  { %203 = vsyncpa [#allocation7], 1 }

</bundles_post_ra>
